<compile_context>
chip_gen: v6e
topology: v6e:2x2x1
jax: 0.10.0
libtpu: 0.0.40
codegen_flags: <defaults>
</compile_context>

<pallas_src>
import math

import jax
import jax.numpy as jnp
import numpy as np
from jax import lax
from jax.experimental import pallas as pl
from jax.experimental.pallas import tpu as pltpu  # noqa: F401  (TPU backend)

INPUT_SIZE = 16
INPUT_FULL = 24               # full inp width; only first INPUT_SIZE cols used
H = 128                       # hidden_dim = embed_dim
NUM_AGENTS = 4
BSZ = 2
N = NUM_AGENTS * BSZ          # 8 rows, agent-major
K_ROUNDS = 3
NORM = 1.0 / math.sqrt(H)     # 1/sqrt(key_dim)
NEG_BIG = -1e30

# row layout of the small (24, 128) weight slab
ROW_ENC_W = 0                     # rows [0, INPUT_SIZE)        : encoder weight
ROW_ENC_B = INPUT_SIZE            # encoder bias
ROW_BU = INPUT_SIZE + 1           # update bias
ROW_WG_H = INPUT_SIZE + 2         # gate weight (h part), row vector
ROW_WG_M = INPUT_SIZE + 3         # gate weight (m part, Wo folded), row vector
ROW_BG = INPUT_SIZE + 4           # gate bias (broadcast across the row)
SMALL_ROWS = 24                   # padded to a multiple of 8 sublanes


# ---------------------------------------------------------------------------
# Fused kernel: encoder + K rounds of message passing + gate
# ---------------------------------------------------------------------------
def fused_mpnn_kernel(inp_ref, small_ref, big_ref, o_ref):
    small = small_ref[...]                                   # (24, 128)
    enc_w = small[ROW_ENC_W:ROW_ENC_W + INPUT_SIZE, :]       # (16, 128)
    enc_b = small[ROW_ENC_B:ROW_ENC_B + 1, :]                # (1, 128)
    bu = small[ROW_BU:ROW_BU + 1, :]                         # (1, 128)
    wg_h = small[ROW_WG_H:ROW_WG_H + 1, :]                   # (1, 128)
    wg_m = small[ROW_WG_M:ROW_WG_M + 1, :]                   # (1, 128)
    bg = small[ROW_BG:ROW_BG + 1, 0:1]                       # (1, 1)

    big = big_ref[...]                                       # (128, 640)
    w_qkvu = big[:, :4 * H]                                  # [Wq|Wk|Wv|Wu_h]
    wu_m = big[:, 4 * H:5 * H]                               # Wo @ Wu_m (folded)

    # encoder: ReLU(inp[:, :INPUT_SIZE] @ We + be)            (N, H)
    x = inp_ref[...][:, :INPUT_SIZE]
    h = jnp.maximum(
        jnp.dot(x, enc_w, preferred_element_type=jnp.float32) + enc_b, 0.0)

    # static additive block mask, generated in-kernel:
    # agent-major rows i, j interact iff i % BSZ == j % BSZ (same batch elem)
    row = lax.broadcasted_iota(jnp.int32, (N, N), 0)
    col = lax.broadcasted_iota(jnp.int32, (N, N), 1)
    if BSZ & (BSZ - 1) == 0:
        same = (row & (BSZ - 1)) == (col & (BSZ - 1))
    else:
        same = (row % BSZ) == (col % BSZ)
    bias = jnp.where(same, 0.0, NEG_BIG).astype(jnp.float32)  # (N, N)

    for k in range(K_ROUNDS):     # static unroll; same weights every round
        # one wide MXU matmul gives q, k, v and the h-part of the update
        hp = jnp.dot(h, w_qkvu, preferred_element_type=jnp.float32)  # (N, 4H)
        q = hp[:, 0 * H:1 * H]
        kk = hp[:, 1 * H:2 * H]
        v = hp[:, 2 * H:3 * H]
        u_h = hp[:, 3 * H:4 * H]                                      # h @ Wu[:H]

        # attention scores, contracting feature dims (no k transpose)
        compat = NORM * lax.dot_general(
            q, kk, (((1,), (1,)), ((), ())),
            preferred_element_type=jnp.float32) + bias                # (N, N)
        compat = compat - jnp.max(compat, axis=-1, keepdims=True)
        e = jnp.exp(compat)
        attn = e * pl.reciprocal(jnp.sum(e, axis=-1, keepdims=True),
                                 approx=False)
        # With Wo folded into Wu_m / wg_m, `heads` plays the role of `m`.
        heads = jnp.dot(attn, v, preferred_element_type=jnp.float32)  # (N, H)

        # update: ReLU(concat(h, m) @ Wu + bu), concat avoided by split Wu
        h_new = jnp.maximum(
            u_h + jnp.dot(heads, wu_m, preferred_element_type=jnp.float32)
            + bu, 0.0)

        if k == K_ROUNDS - 1:
            # gate Linear(2H, 1): VPU broadcast-mul + lane reduction
            g = (jnp.sum(h * wg_h, axis=-1, keepdims=True)
                 + jnp.sum(heads * wg_m, axis=-1, keepdims=True)
                 + bg)                                                # (N, 1)
            h_new = jax.nn.sigmoid(g) * h_new
        h = h_new

    o_ref[...] = h


# ---------------------------------------------------------------------------
# Wrapper
# ---------------------------------------------------------------------------
def pack_params(p):
    """One-time packing of weights into the kernel's two slabs."""
    # small slab: encoder weight + all row/scalar vectors, padded to 24 rows
    small = jnp.concatenate([
        p["enc_w"],                                     # (16, 128)
        p["enc_b"],                                     # (1, 128)
        p["bu"],                                        # (1, 128)
        p["wg_h"].T,                                    # (1, 128)
        (p["wo"] @ p["wg_m"]).T,                        # (1, 128)  Wo folded
        jnp.broadcast_to(p["bg"], (1, H)),              # (1, 128)
        jnp.zeros((SMALL_ROWS - (INPUT_SIZE + 5), H), jnp.float32),
    ], axis=0)                                          # (24, 128)

    # big slab: [Wq | Wk | Wv | Wu_h | Wo @ Wu_m]       (128, 640)
    big = jnp.concatenate(
        [p["wq"], p["wk"], p["wv"], p["wu_h"], p["wo"] @ p["wu_m"]], axis=1)
    return {"small": small, "big": big}


@jax.jit
def gated_mpnn_fwd(inp, kp):
    return pl.pallas_call(
        fused_mpnn_kernel,
        out_shape=jax.ShapeDtypeStruct((N, H), jnp.float32),
    )(inp, kp["small"], kp["big"])


# ---------------------------------------------------------------------------
# Pure-JAX reference (original batched (B, A, H) formulation, unfolded weights)
# ---------------------------------------------------------------------------
def ref_fwd(inp, p):
    x = inp[:, :INPUT_SIZE]
    h = jax.nn.relu(x @ p["enc_w"] + p["enc_b"])
    h = h.reshape(NUM_AGENTS, BSZ, H).transpose(1, 0, 2)
    wu = jnp.concatenate([p["wu_h"], p["wu_m"]], axis=0)
    wg = jnp.concatenate([p["wg_h"], p["wg_m"]], axis=0)
    for k in range(K_ROUNDS):
        q = h @ p["wq"]; kk = h @ p["wk"]; v = h @ p["wv"]
        compat = NORM * jnp.einsum("bqd,bkd->bqk", q, kk)
        attn = jax.nn.softmax(compat, axis=-1)
        m = jnp.einsum("bqk,bkd->bqd", attn, v) @ p["wo"]
        hm = jnp.concatenate([h, m], axis=-1)
        h_new = jax.nn.relu(hm @ wu + p["bu"])
        if k == K_ROUNDS - 1:
            h_new = jax.nn.sigmoid(hm @ wg + p["bg"]) * h_new
        h = h_new
    return h.transpose(1, 0, 2).reshape(-1, H)


# ---------------------------------------------------------------------------
def init_params(key):
    ks = jax.random.split(key, 8)
    ortho = jax.nn.initializers.orthogonal()
    stdv = 1.0 / math.sqrt(H)
    u = lambda k, shape: jax.random.uniform(k, shape, jnp.float32, -stdv, stdv)
    wu = ortho(ks[5], (2 * H, H), jnp.float32)
    wg = ortho(ks[6], (2 * H, 1), jnp.float32)
    return {
        "enc_w": ortho(ks[0], (INPUT_SIZE, H), jnp.float32),
        "enc_b": jnp.zeros((1, H), jnp.float32),
        "wq": u(ks[1], (H, H)),
        "wk": u(ks[2], (H, H)),
        "wv": u(ks[3], (H, H)),
        "wo": u(ks[4], (H, H)),
        "wu_h": wu[:H], "wu_m": wu[H:], "bu": jnp.zeros((1, H), jnp.float32),
        "wg_h": wg[:H], "wg_m": wg[H:], "bg": jnp.zeros((1, 1), jnp.float32),
    }


if __name__ == "__main__":
    key = jax.random.PRNGKey(0)
    pkey, xkey = jax.random.split(key)
    params = init_params(pkey)
    kparams = pack_params(params)

    # inp rows are agent-major: agent 0's batch rows first, then agent 1's, ...
    # columns beyond INPUT_SIZE (landmark data when entity_mp=True) are ignored
    # by _fwd's agent path; the slice now happens inside the kernel.
    inp = jax.random.normal(xkey, (N, INPUT_FULL), jnp.float32)

    out = jax.block_until_ready(gated_mpnn_fwd(inp, kparams))
    ref = jax.block_until_ready(ref_fwd(inp, params))

    assert out.shape == (N, H)
    np.testing.assert_allclose(np.asarray(out), np.asarray(ref),
                               rtol=1e-4, atol=1e-4)
    # TODO(synk): value/policy heads and the Categorical dist are outside _fwd
    # and are not part of the translated forward path.
    print("KERNEL_OK")
</pallas_src>

<mosaic_0001>
module attributes {stable_mosaic.version = 11 : i64} {
  func.func @fused_mpnn_kernel(%arg0: memref<8x24xf32, #tpu.memory_space<vmem>>, %arg1: memref<24x128xf32, #tpu.memory_space<vmem>>, %arg2: memref<128x640xf32, #tpu.memory_space<vmem>>, %arg3: memref<8x128xf32, #tpu.memory_space<vmem>>) attributes {dimension_semantics = [], scalar_prefetch = 0 : i64, scratch_operands = 0 : i64, tpu.core_type = #tpu.core_type<tc>} {
    %c0 = arith.constant 0 : index
    %c0_0 = arith.constant 0 : index
    %0 = vector.load %arg1[%c0, %c0_0] : memref<24x128xf32, #tpu.memory_space<vmem>>, vector<24x128xf32>
    %1 = vector.extract_strided_slice %0 {offsets = [0, 0], sizes = [16, 128], strides = [1, 1]} : vector<24x128xf32> to vector<16x128xf32>
    %2 = vector.extract_strided_slice %0 {offsets = [16, 0], sizes = [1, 128], strides = [1, 1]} : vector<24x128xf32> to vector<1x128xf32>
    %3 = vector.extract_strided_slice %0 {offsets = [17, 0], sizes = [1, 128], strides = [1, 1]} : vector<24x128xf32> to vector<1x128xf32>
    %4 = vector.extract_strided_slice %0 {offsets = [18, 0], sizes = [1, 128], strides = [1, 1]} : vector<24x128xf32> to vector<1x128xf32>
    %5 = vector.extract_strided_slice %0 {offsets = [19, 0], sizes = [1, 128], strides = [1, 1]} : vector<24x128xf32> to vector<1x128xf32>
    %6 = vector.extract_strided_slice %0 {offsets = [20, 0], sizes = [1, 1], strides = [1, 1]} : vector<24x128xf32> to vector<1x1xf32>
    %c0_1 = arith.constant 0 : index
    %c0_2 = arith.constant 0 : index
    %7 = vector.load %arg2[%c0_1, %c0_2] : memref<128x640xf32, #tpu.memory_space<vmem>>, vector<128x640xf32>
    %8 = vector.extract_strided_slice %7 {offsets = [0, 0], sizes = [128, 512], strides = [1, 1]} : vector<128x640xf32> to vector<128x512xf32>
    %9 = vector.extract_strided_slice %7 {offsets = [0, 512], sizes = [128, 128], strides = [1, 1]} : vector<128x640xf32> to vector<128x128xf32>
    %c0_3 = arith.constant 0 : index
    %c0_4 = arith.constant 0 : index
    %10 = vector.load %arg0[%c0_3, %c0_4] : memref<8x24xf32, #tpu.memory_space<vmem>>, vector<8x24xf32>
    %11 = vector.extract_strided_slice %10 {offsets = [0, 0], sizes = [8, 16], strides = [1, 1]} : vector<8x24xf32> to vector<8x16xf32>
    %cst = arith.constant dense<0.000000e+00> : vector<8x128xf32>
    %12 = tpu.matmul %11, %1, %cst {dimension_numbers = #tpu.dot_dimension_numbers<[1], [0], [0], [1], [0, 0, 1, 1], [], []>} : vector<8x16xf32>, vector<16x128xf32>, vector<8x128xf32> -> vector<8x128xf32>
    %13 = vector.broadcast %2 : vector<1x128xf32> to vector<8x128xf32>
    %14 = arith.addf %12, %13 : vector<8x128xf32>
    %cst_5 = arith.constant 0.000000e+00 : f32
    %15 = vector.broadcast %cst_5 : f32 to vector<8x128xf32>
    %16 = arith.maximumf %14, %15 : vector<8x128xf32>
    %17 = tpu.iota {dimensions = array<i32: 0>} : vector<8x8xi32>
    %18 = tpu.iota {dimensions = array<i32: 1>} : vector<8x8xi32>
    %c1_i32 = arith.constant 1 : i32
    %19 = vector.broadcast %c1_i32 : i32 to vector<8x8xi32>
    %20 = arith.andi %17, %19 : vector<8x8xi32>
    %c1_i32_6 = arith.constant 1 : i32
    %21 = vector.broadcast %c1_i32_6 : i32 to vector<8x8xi32>
    %22 = arith.andi %18, %21 : vector<8x8xi32>
    %23 = arith.cmpi eq, %20, %22 : vector<8x8xi32>
    %cst_7 = arith.constant 0.000000e+00 : f32
    %cst_8 = arith.constant -1.000000e+30 : f32
    %24 = vector.broadcast %cst_7 : f32 to vector<8x8xf32>
    %25 = vector.broadcast %cst_8 : f32 to vector<8x8xf32>
    %26 = arith.select %23, %24, %25 : vector<8x8xi1>, vector<8x8xf32>
    %cst_9 = arith.constant dense<0.000000e+00> : vector<8x512xf32>
    %27 = tpu.matmul %16, %8, %cst_9 {dimension_numbers = #tpu.dot_dimension_numbers<[1], [0], [0], [1], [0, 0, 1, 1], [], []>} : vector<8x128xf32>, vector<128x512xf32>, vector<8x512xf32> -> vector<8x512xf32>
    %28 = vector.extract_strided_slice %27 {offsets = [0, 0], sizes = [8, 128], strides = [1, 1]} : vector<8x512xf32> to vector<8x128xf32>
    %29 = vector.extract_strided_slice %27 {offsets = [0, 128], sizes = [8, 128], strides = [1, 1]} : vector<8x512xf32> to vector<8x128xf32>
    %30 = vector.extract_strided_slice %27 {offsets = [0, 256], sizes = [8, 128], strides = [1, 1]} : vector<8x512xf32> to vector<8x128xf32>
    %31 = vector.extract_strided_slice %27 {offsets = [0, 384], sizes = [8, 128], strides = [1, 1]} : vector<8x512xf32> to vector<8x128xf32>
    %cst_10 = arith.constant dense<0.000000e+00> : vector<8x8xf32>
    %32 = tpu.matmul %28, %29, %cst_10 {dimension_numbers = #tpu.dot_dimension_numbers<[1], [1], [0], [0], [0, 0, 1, 0], [], []>} : vector<8x128xf32>, vector<8x128xf32>, vector<8x8xf32> -> vector<8x8xf32>
    %cst_11 = arith.constant 0.0883883461 : f32
    %33 = vector.broadcast %cst_11 : f32 to vector<8x8xf32>
    %34 = arith.mulf %33, %32 : vector<8x8xf32>
    %35 = arith.addf %34, %26 : vector<8x8xf32>
    %cst_12 = arith.constant dense<0xFF800000> : vector<8xf32>
    %36 = vector.multi_reduction <maximumf>, %35, %cst_12 [1] : vector<8x8xf32> to vector<8xf32>
    %37 = vector.shape_cast %36 : vector<8xf32> to vector<8x1xf32>
    %38 = vector.broadcast %37 : vector<8x1xf32> to vector<8x8xf32>
    %39 = arith.subf %35, %38 : vector<8x8xf32>
    %40 = math.exp %39 : vector<8x8xf32>
    %cst_13 = arith.constant dense<0.000000e+00> : vector<8xf32>
    %41 = vector.multi_reduction <add>, %40, %cst_13 [1] : vector<8x8xf32> to vector<8xf32>
    %42 = vector.shape_cast %41 : vector<8xf32> to vector<8x1xf32>
    %43 = tpu.reciprocal %42 : vector<8x1xf32> -> vector<8x1xf32>
    %44 = vector.broadcast %43 : vector<8x1xf32> to vector<8x8xf32>
    %45 = arith.mulf %40, %44 : vector<8x8xf32>
    %cst_14 = arith.constant dense<0.000000e+00> : vector<8x128xf32>
    %46 = tpu.matmul %45, %30, %cst_14 {dimension_numbers = #tpu.dot_dimension_numbers<[1], [0], [0], [1], [0, 0, 1, 1], [], []>} : vector<8x8xf32>, vector<8x128xf32>, vector<8x128xf32> -> vector<8x128xf32>
    %cst_15 = arith.constant dense<0.000000e+00> : vector<8x128xf32>
    %47 = tpu.matmul %46, %9, %cst_15 {dimension_numbers = #tpu.dot_dimension_numbers<[1], [0], [0], [1], [0, 0, 1, 1], [], []>} : vector<8x128xf32>, vector<128x128xf32>, vector<8x128xf32> -> vector<8x128xf32>
    %48 = arith.addf %31, %47 : vector<8x128xf32>
    %49 = vector.broadcast %3 : vector<1x128xf32> to vector<8x128xf32>
    %50 = arith.addf %48, %49 : vector<8x128xf32>
    %cst_16 = arith.constant 0.000000e+00 : f32
    %51 = vector.broadcast %cst_16 : f32 to vector<8x128xf32>
    %52 = arith.maximumf %50, %51 : vector<8x128xf32>
    %cst_17 = arith.constant dense<0.000000e+00> : vector<8x512xf32>
    %53 = tpu.matmul %52, %8, %cst_17 {dimension_numbers = #tpu.dot_dimension_numbers<[1], [0], [0], [1], [0, 0, 1, 1], [], []>} : vector<8x128xf32>, vector<128x512xf32>, vector<8x512xf32> -> vector<8x512xf32>
    %54 = vector.extract_strided_slice %53 {offsets = [0, 0], sizes = [8, 128], strides = [1, 1]} : vector<8x512xf32> to vector<8x128xf32>
    %55 = vector.extract_strided_slice %53 {offsets = [0, 128], sizes = [8, 128], strides = [1, 1]} : vector<8x512xf32> to vector<8x128xf32>
    %56 = vector.extract_strided_slice %53 {offsets = [0, 256], sizes = [8, 128], strides = [1, 1]} : vector<8x512xf32> to vector<8x128xf32>
    %57 = vector.extract_strided_slice %53 {offsets = [0, 384], sizes = [8, 128], strides = [1, 1]} : vector<8x512xf32> to vector<8x128xf32>
    %cst_18 = arith.constant dense<0.000000e+00> : vector<8x8xf32>
    %58 = tpu.matmul %54, %55, %cst_18 {dimension_numbers = #tpu.dot_dimension_numbers<[1], [1], [0], [0], [0, 0, 1, 0], [], []>} : vector<8x128xf32>, vector<8x128xf32>, vector<8x8xf32> -> vector<8x8xf32>
    %cst_19 = arith.constant 0.0883883461 : f32
    %59 = vector.broadcast %cst_19 : f32 to vector<8x8xf32>
    %60 = arith.mulf %59, %58 : vector<8x8xf32>
    %61 = arith.addf %60, %26 : vector<8x8xf32>
    %cst_20 = arith.constant dense<0xFF800000> : vector<8xf32>
    %62 = vector.multi_reduction <maximumf>, %61, %cst_20 [1] : vector<8x8xf32> to vector<8xf32>
    %63 = vector.shape_cast %62 : vector<8xf32> to vector<8x1xf32>
    %64 = vector.broadcast %63 : vector<8x1xf32> to vector<8x8xf32>
    %65 = arith.subf %61, %64 : vector<8x8xf32>
    %66 = math.exp %65 : vector<8x8xf32>
    %cst_21 = arith.constant dense<0.000000e+00> : vector<8xf32>
    %67 = vector.multi_reduction <add>, %66, %cst_21 [1] : vector<8x8xf32> to vector<8xf32>
    %68 = vector.shape_cast %67 : vector<8xf32> to vector<8x1xf32>
    %69 = tpu.reciprocal %68 : vector<8x1xf32> -> vector<8x1xf32>
    %70 = vector.broadcast %69 : vector<8x1xf32> to vector<8x8xf32>
    %71 = arith.mulf %66, %70 : vector<8x8xf32>
    %cst_22 = arith.constant dense<0.000000e+00> : vector<8x128xf32>
    %72 = tpu.matmul %71, %56, %cst_22 {dimension_numbers = #tpu.dot_dimension_numbers<[1], [0], [0], [1], [0, 0, 1, 1], [], []>} : vector<8x8xf32>, vector<8x128xf32>, vector<8x128xf32> -> vector<8x128xf32>
    %cst_23 = arith.constant dense<0.000000e+00> : vector<8x128xf32>
    %73 = tpu.matmul %72, %9, %cst_23 {dimension_numbers = #tpu.dot_dimension_numbers<[1], [0], [0], [1], [0, 0, 1, 1], [], []>} : vector<8x128xf32>, vector<128x128xf32>, vector<8x128xf32> -> vector<8x128xf32>
    %74 = arith.addf %57, %73 : vector<8x128xf32>
    %75 = vector.broadcast %3 : vector<1x128xf32> to vector<8x128xf32>
    %76 = arith.addf %74, %75 : vector<8x128xf32>
    %cst_24 = arith.constant 0.000000e+00 : f32
    %77 = vector.broadcast %cst_24 : f32 to vector<8x128xf32>
    %78 = arith.maximumf %76, %77 : vector<8x128xf32>
    %cst_25 = arith.constant dense<0.000000e+00> : vector<8x512xf32>
    %79 = tpu.matmul %78, %8, %cst_25 {dimension_numbers = #tpu.dot_dimension_numbers<[1], [0], [0], [1], [0, 0, 1, 1], [], []>} : vector<8x128xf32>, vector<128x512xf32>, vector<8x512xf32> -> vector<8x512xf32>
    %80 = vector.extract_strided_slice %79 {offsets = [0, 0], sizes = [8, 128], strides = [1, 1]} : vector<8x512xf32> to vector<8x128xf32>
    %81 = vector.extract_strided_slice %79 {offsets = [0, 128], sizes = [8, 128], strides = [1, 1]} : vector<8x512xf32> to vector<8x128xf32>
    %82 = vector.extract_strided_slice %79 {offsets = [0, 256], sizes = [8, 128], strides = [1, 1]} : vector<8x512xf32> to vector<8x128xf32>
    %83 = vector.extract_strided_slice %79 {offsets = [0, 384], sizes = [8, 128], strides = [1, 1]} : vector<8x512xf32> to vector<8x128xf32>
    %cst_26 = arith.constant dense<0.000000e+00> : vector<8x8xf32>
    %84 = tpu.matmul %80, %81, %cst_26 {dimension_numbers = #tpu.dot_dimension_numbers<[1], [1], [0], [0], [0, 0, 1, 0], [], []>} : vector<8x128xf32>, vector<8x128xf32>, vector<8x8xf32> -> vector<8x8xf32>
    %cst_27 = arith.constant 0.0883883461 : f32
    %85 = vector.broadcast %cst_27 : f32 to vector<8x8xf32>
    %86 = arith.mulf %85, %84 : vector<8x8xf32>
    %87 = arith.addf %86, %26 : vector<8x8xf32>
    %cst_28 = arith.constant dense<0xFF800000> : vector<8xf32>
    %88 = vector.multi_reduction <maximumf>, %87, %cst_28 [1] : vector<8x8xf32> to vector<8xf32>
    %89 = vector.shape_cast %88 : vector<8xf32> to vector<8x1xf32>
    %90 = vector.broadcast %89 : vector<8x1xf32> to vector<8x8xf32>
    %91 = arith.subf %87, %90 : vector<8x8xf32>
    %92 = math.exp %91 : vector<8x8xf32>
    %cst_29 = arith.constant dense<0.000000e+00> : vector<8xf32>
    %93 = vector.multi_reduction <add>, %92, %cst_29 [1] : vector<8x8xf32> to vector<8xf32>
    %94 = vector.shape_cast %93 : vector<8xf32> to vector<8x1xf32>
    %95 = tpu.reciprocal %94 : vector<8x1xf32> -> vector<8x1xf32>
    %96 = vector.broadcast %95 : vector<8x1xf32> to vector<8x8xf32>
    %97 = arith.mulf %92, %96 : vector<8x8xf32>
    %cst_30 = arith.constant dense<0.000000e+00> : vector<8x128xf32>
    %98 = tpu.matmul %97, %82, %cst_30 {dimension_numbers = #tpu.dot_dimension_numbers<[1], [0], [0], [1], [0, 0, 1, 1], [], []>} : vector<8x8xf32>, vector<8x128xf32>, vector<8x128xf32> -> vector<8x128xf32>
    %cst_31 = arith.constant dense<0.000000e+00> : vector<8x128xf32>
    %99 = tpu.matmul %98, %9, %cst_31 {dimension_numbers = #tpu.dot_dimension_numbers<[1], [0], [0], [1], [0, 0, 1, 1], [], []>} : vector<8x128xf32>, vector<128x128xf32>, vector<8x128xf32> -> vector<8x128xf32>
    %100 = arith.addf %83, %99 : vector<8x128xf32>
    %101 = vector.broadcast %3 : vector<1x128xf32> to vector<8x128xf32>
    %102 = arith.addf %100, %101 : vector<8x128xf32>
    %cst_32 = arith.constant 0.000000e+00 : f32
    %103 = vector.broadcast %cst_32 : f32 to vector<8x128xf32>
    %104 = arith.maximumf %102, %103 : vector<8x128xf32>
    %105 = vector.broadcast %4 : vector<1x128xf32> to vector<8x128xf32>
    %106 = arith.mulf %78, %105 : vector<8x128xf32>
    %cst_33 = arith.constant dense<0.000000e+00> : vector<8xf32>
    %107 = vector.multi_reduction <add>, %106, %cst_33 [1] : vector<8x128xf32> to vector<8xf32>
    %108 = vector.shape_cast %107 : vector<8xf32> to vector<8x1xf32>
    %109 = vector.broadcast %5 : vector<1x128xf32> to vector<8x128xf32>
    %110 = arith.mulf %98, %109 : vector<8x128xf32>
    %cst_34 = arith.constant dense<0.000000e+00> : vector<8xf32>
    %111 = vector.multi_reduction <add>, %110, %cst_34 [1] : vector<8x128xf32> to vector<8xf32>
    %112 = vector.shape_cast %111 : vector<8xf32> to vector<8x1xf32>
    %113 = arith.addf %108, %112 : vector<8x1xf32>
    %114 = vector.broadcast %6 : vector<1x1xf32> to vector<8x1xf32>
    %115 = arith.addf %113, %114 : vector<8x1xf32>
    %116 = arith.negf %115 : vector<8x1xf32>
    %117 = math.exp %116 : vector<8x1xf32>
    %cst_35 = arith.constant 1.000000e+00 : f32
    %118 = vector.broadcast %cst_35 : f32 to vector<8x1xf32>
    %119 = arith.addf %118, %117 : vector<8x1xf32>
    %120 = arith.divf %118, %119 : vector<8x1xf32>
    %121 = vector.broadcast %120 : vector<8x1xf32> to vector<8x128xf32>
    %122 = arith.mulf %121, %104 : vector<8x128xf32>
    %c0_36 = arith.constant 0 : index
    %c0_37 = arith.constant 0 : index
    %123 = vector.load %arg3[%c0_36, %c0_37] : memref<8x128xf32, #tpu.memory_space<vmem>>, vector<8x128xf32>
    tpu.vector_store %arg3[%c0_36, %c0_37], %122 {strides = array<i32>} : memref<8x128xf32, #tpu.memory_space<vmem>>, vector<8x128xf32>,
    return
  }
}

</mosaic_0001>

<bundles_post_ra>
// kernel: gated_mpnn_fwd.1
= control target key start
LH: loop header
LB: loop body
LE: loop exit
PB: predicated region body
PF: predicated region fallthrough
CT: control target
= control target key end

     0   :  { %8 = vsyncpa [#allocation3], 0  ;;  %s2283_s0 = inlined_call_operand.hbm [shape: f32[8,24], index: 0, kind: input, shape index: {}]   ;;  %s2284_s1 = inlined_call_operand.hbm [shape: f32[24,128], index: 1, kind: input, shape index: {}]   ;;  %s2285_s2 = inlined_call_operand.hbm [shape: f32[128,640], index: 2, kind: input, shape index: {}]   ;;  %s2286_s3 = inlined_call_operand.hbm [shape: f32[8,128], index: 3, kind: output, shape index: {}]  }
   0x1   :  { %9 = vsyncpa [#allocation6], 0 }
   0x2   :  { %10 = vsyncpa [#allocation4], 0  ;;  %s1720_s12 = smov [#allocation5]  }
   0x3   :  { %s26_s13 = sshll.u32 %s1720_s12, 4  ;;  %s27_s13 = int_to_ptr.vmem [resolvable:$true] %s26_s13 }
   0x4   :  { %s1642_s14 = scalar_lea.vmem %s27_s13, 384  ;;  %p1647_p1 = scmp.lt.s32.totalorder %s27_s13, %s27_s13 }
   0x5   :  { %p1643_p0 = scmp.ne.s32.totalorder %s27_s13, %s1642_s14  ;;  %p1648_p2 = scmp.lt.s32.totalorder %s1642_s14, %s1642_s14 }
   0x7   :  { %p1649_p3 = por %p1648_p2, %p1647_p1 }
   0x9   :  { %p1650_p4 = pnand %p1649_p3, %p1643_p0 }
   0xb   :  { %1653 = shalt.err (!%p1650_p4)
}
   0xc   :  { %s1721_s15 = smov 128   ;;  %s1722_s16 = smov 8  }
   0xd   :  { %32 = dma.hbm_to_vmem [thread:$0]  %s2284_s1, 384, %s27_s13, [#allocation6], %s1721_s15, %s1721_s15, %s1722_s16  }
   0xe   :  { %s1723_s19 = smov [#allocation2]   ;;  %s1724_s21 = smov [#allocation7]  }
   0xf   :  { %s17_s20 = sshll.u32 %s1723_s19, 4  ;;  %s38_s22 = sshll.u32 %s1724_s21, 4  ;;  %s18_s20 = int_to_ptr.vmem [resolvable:$true] %s17_s20  ;;  %s39_s22 = int_to_ptr.vmem [resolvable:$true] %s38_s22 }
  0x10   :  { %s1662_s23 = scalar_lea.vmem %s18_s20, 128  ;;  %p1667_p6 = scmp.lt.s32.totalorder %s18_s20, %s18_s20 }
  0x11   :  { %p1663_p5 = scmp.ne.s32.totalorder %s18_s20, %s1662_s23  ;;  %p1668_p7 = scmp.lt.s32.totalorder %s1662_s23, %s1662_s23 }
  0x13   :  { %p1669_p8 = por %p1668_p7, %p1667_p6 }
  0x15   :  { %p1670_p9 = pnand %p1669_p8, %p1663_p5 }
  0x17   :  { %1673 = shalt.err (!%p1670_p9)
}
  0x18   :  { %20 = dma.hbm_to_vmem [thread:$0]  %s2283_s0, 128, %s18_s20, [#allocation3]  }
  0x19   :  { %s1682_s26 = scalar_lea.vmem %s39_s22, 10240  ;;  %p1687_p11 = scmp.lt.s32.totalorder %s39_s22, %s39_s22 }
  0x1a   :  { %p1683_p10 = scmp.ne.s32.totalorder %s39_s22, %s1682_s26  ;;  %p1688_p12 = scmp.lt.s32.totalorder %s1682_s26, %s1682_s26 }
  0x1c   :  { %p1689_p13 = por %p1688_p12, %p1687_p11 }
  0x1e   :  { %p1690_p0 = pnand %p1689_p13, %p1683_p10 }
  0x20   :  { %1693 = shalt.err (!%p1690_p0)
}
  0x21   :  { %s1725_s1 = smov 640   ;;  %s1726_s27 = smov 40  }
  0x22   :  { %44 = dma.hbm_to_vmem [thread:$0]  %s2285_s2, 10240, %s39_s22, [#allocation6], %s1725_s1, %s1725_s1, %s1726_s27  }
  0x23   :  { %1714 = dma.done.wait [#allocation3], 128  }
  0x24   :  { %1715 = vsyncadd [#allocation3], 4294967168 }
  0x25   :  { %1716 = dma.done.wait [#allocation6], 10624  }
  0x26   :  { %1717 = vsyncadd [#allocation6], 4294956672  ;;  %v2287_v0 = vmov 0.0   ;;  %vm1728_vm0 = vmmov 0   ;;  %v55_v1 = vld [vmem:[#allocation5 + $0x8] sm:$0xff]  ;;  %v54_v2 = vld [vmem:[#allocation5] sm:$0xff] }
  0x27   :  { %1463 = vmatprep.subr.mxu0 %v2287_v0  ;;  %1467 = vmatprep.mubr.msk.f32.mxu0 %vm1728_vm0, %v2287_v0  ;;  %v137_v3 = vld [vmem:[#allocation2] sm:$0xff]  ;;  %vm142_vm1 = vcmask 130048   ;;  %v1767_v5 = vld [vmem:[#allocation7 + $0x270] sm:$0xff]  ;;  %v1769_v6 = vld [vmem:[#allocation7 + $0x258] sm:$0xff]  ;;  %vm439_vm3 = vcmask 64512   ;;  %s1731_s0 = smov [#allocation8]  }
  0x28   :  { %289 = vmatprep.mubr.f32.mxu1 %v2287_v0  ;;  %1464 = vmatpush3.msra.mxu0 %v55_v1  ;;  %v1765_v4 = vld [vmem:[#allocation7 + $0x260] sm:$0xff]  ;;  %v1773_v7 = vld [vmem:[#allocation7 + $0x268] sm:$0xff]  ;;  %v1775_v8 = vld [vmem:[#allocation7 + $0x238] sm:$0xff]  ;;  %s1382_s2 = sshll.u32 %s1731_s0, 4  ;;  %s1383_s2 = int_to_ptr.vmem [resolvable:$true] %s1382_s2 }
  0x29   :  { %2345 = vst [vmem:[#allocation12_spill] sm:$0xff] %v1765_v4  ;;  %1465 = vmatprep.subr.mxu0 %v2287_v0  ;;  %225 = vmatprep.subr.mxu1 %v1765_v4  ;;  %v1778_v9 = vld [vmem:[#allocation7 + $0x248] sm:$0xff]  ;;  %v1780_v10 = vld [vmem:[#allocation7 + $0x230] sm:$0xff]  ;;  %v1783_v11 = vld [vmem:[#allocation7 + $0x240] sm:$0xff]  ;;  %s1694_s30 = scalar_lea.vmem %s1383_s2, 128  ;;  %p1699_p2 = scmp.lt.s32.totalorder %s1383_s2, %s1383_s2 }
  0x2a   :  { %1466 = vmatpush3.msra.mxu0 %v54_v2  ;;  %226 = vmatpush1.msra.mxu1 %v1769_v6  ;;  %v1785_v12 = vld [vmem:[#allocation7 + $0x210] sm:$0xff]  ;;  %v1789_v13 = vld [vmem:[#allocation7 + $0x220] sm:$0xff]  ;;  %v1791_v14 = vld [vmem:[#allocation7 + $0x208] sm:$0xff]  ;;  %p1695_p1 = scmp.ne.s32.totalorder %s1383_s2, %s1694_s30  ;;  %p1700_p3 = scmp.lt.s32.totalorder %s1694_s30, %s1694_s30 }
  0x2b   :  { %1468 = vmatmul.mubr.msk.f32.vlgmr.msra.gmra.mxu0 %vm142_vm1, %v137_v3  ;;  %296 = vmatprep.subr.mxu0 %v1767_v5  ;;  %v1795_v15 = vld [vmem:[#allocation7 + $0x218] sm:$0xff]  ;;  %v1797_v16 = vld [vmem:[#allocation7 + $0x1e8] sm:$0xff]  ;;  %v1803_v18 = vld [vmem:[#allocation7 + $0x1e0] sm:$0xff] }
  0x2c   :  { %297 = vmatpush1.msra.mxu0 %v1773_v7  ;;  %227 = vmatprep.subr.mxu1 %v1775_v8  ;;  %v1801_v17 = vld [vmem:[#allocation7 + $0x1f8] sm:$0xff]  ;;  %v1807_v19 = vld [vmem:[#allocation7 + $0x1f0] sm:$0xff]  ;;  %v1809_v20 = vld [vmem:[#allocation7 + $0x1c0] sm:$0xff]  ;;  %p1701_p4 = por %p1700_p3, %p1699_p2 }
  0x2d   :  { %298 = vmatprep.subr.mxu0 %v1778_v9  ;;  %228 = vmatpush1.msra.mxu1 %v1780_v10  ;;  %v1813_v21 = vld [vmem:[#allocation7 + $0x1d0] sm:$0xff]  ;;  %v1815_v22 = vld [vmem:[#allocation7 + $0x1b8] sm:$0xff]  ;;  %v1819_v23 = vld [vmem:[#allocation7 + $0x1c8] sm:$0xff] }
  0x2e   :  { %299 = vmatpush1.msra.mxu0 %v1783_v11  ;;  %229 = vmatprep.subr.mxu1 %v1785_v12  ;;  %2346 = vst [vmem:[#allocation13_spill] sm:$0xff] %v1813_v21  ;;  %2347 = vst [vmem:[#allocation14_spill] sm:$0xff] %v1819_v23  ;;  %v1821_v24 = vld [vmem:[#allocation7 + $0x198] sm:$0xff]  ;;  %v1825_v25 = vld [vmem:[#allocation7 + $0x1a8] sm:$0xff]  ;;  %p1702_p5 = pnand %p1701_p4, %p1695_p1 }
  0x2f   :  { %300 = vmatprep.subr.mxu0 %v1789_v13  ;;  %230 = vmatpush1.msra.mxu1 %v1791_v14  ;;  %2348 = vst [vmem:[#allocation15_spill] sm:$0xff] %v1825_v25  ;;  %v1827_v26 = vld [vmem:[#allocation7 + $0x190] sm:$0xff]  ;;  %v1831_v27 = vld [vmem:[#allocation7 + $0x1a0] sm:$0xff]  ;;  %v1839_v30 = vld [vmem:[#allocation7 + $0x168] sm:$0xff] }
  0x30   :  { %301 = vmatpush1.msra.mxu0 %v1795_v15  ;;  %231 = vmatprep.subr.mxu1 %v1797_v16  ;;  %2349 = vst [vmem:[#allocation16_spill] sm:$0xff] %v1831_v27  ;;  %v1833_v28 = vld [vmem:[#allocation7 + $0x170] sm:$0xff]  ;;  %v1837_v29 = vld [vmem:[#allocation7 + $0x180] sm:$0xff]  ;;  %v1843_v31 = vld [vmem:[#allocation7 + $0x178] sm:$0xff] }
  0x31   :  { %302 = vmatprep.subr.mxu0 %v1801_v17  ;;  %232 = vmatpush1.msra.mxu1 %v1803_v18  ;;  %2350 = vst [vmem:[#allocation17_spill] sm:$0xff] %v1837_v29  ;;  %2351 = vst [vmem:[#allocation18_spill] sm:$0xff] %v1843_v31  ;;  %v1845_v32 = vld [vmem:[#allocation7 + $0x148] sm:$0xff]  ;;  %v1849_v33 = vld [vmem:[#allocation7 + $0x158] sm:$0xff] }
  0x32   :  { %303 = vmatpush1.msra.mxu0 %v1807_v19  ;;  %233 = vmatprep.subr.mxu1 %v1809_v20  ;;  %2352 = vst [vmem:[#allocation19_spill] sm:$0xff] %v1849_v33  ;;  %v1851_v34 = vld [vmem:[#allocation7 + $0x140] sm:$0xff]  ;;  %v1855_v35 = vld [vmem:[#allocation7 + $0x150] sm:$0xff]  ;;  %v1863_v38 = vld [vmem:[#allocation7 + $0x118] sm:$0xff] }
  0x33   :  { %304 = vmatprep.subr.mxu0 %v1813_v21  ;;  %234 = vmatpush1.msra.mxu1 %v1815_v22  ;;  %2353 = vst [vmem:[#allocation20_spill] sm:$0xff] %v1855_v35  ;;  %v1857_v36 = vld [vmem:[#allocation7 + $0x120] sm:$0xff]  ;;  %v1861_v37 = vld [vmem:[#allocation7 + $0x130] sm:$0xff]  ;;  %v1867_v39 = vld [vmem:[#allocation7 + $0x128] sm:$0xff] }
  0x34   :  { %305 = vmatpush1.msra.mxu0 %v1819_v23  ;;  %235 = vmatprep.subr.mxu1 %v1821_v24  ;;  %2354 = vst [vmem:[#allocation21_spill] sm:$0xff] %v1861_v37  ;;  %2355 = vst [vmem:[#allocation22_spill] sm:$0xff] %v1867_v39  ;;  %v1869_v40 = vld [vmem:[#allocation7 + $0xf8] sm:$0xff]  ;;  %v1873_v41 = vld [vmem:[#allocation7 + $0x108] sm:$0xff] }
  0x35   :  { %306 = vmatprep.subr.mxu0 %v1825_v25  ;;  %236 = vmatpush1.msra.mxu1 %v1827_v26  ;;  %2356 = vst [vmem:[#allocation23_spill] sm:$0xff] %v1873_v41  ;;  %v1875_v42 = vld [vmem:[#allocation7 + $0xf0] sm:$0xff]  ;;  %v1879_v43 = vld [vmem:[#allocation7 + $0x100] sm:$0xff]  ;;  %v1887_v46 = vld [vmem:[#allocation7 + $0xc8] sm:$0xff] }
  0x36   :  { %307 = vmatpush1.msra.mxu0 %v1831_v27  ;;  %237 = vmatprep.subr.mxu1 %v1833_v28  ;;  %2357 = vst [vmem:[#allocation24_spill] sm:$0xff] %v1879_v43  ;;  %v1881_v44 = vld [vmem:[#allocation7 + $0xd0] sm:$0xff]  ;;  %v1885_v45 = vld [vmem:[#allocation7 + $0xe0] sm:$0xff]  ;;  %v1891_v47 = vld [vmem:[#allocation7 + $0xd8] sm:$0xff] }
  0x37   :  { %308 = vmatprep.subr.mxu0 %v1837_v29  ;;  %238 = vmatpush1.msra.mxu1 %v1839_v30  ;;  %2358 = vst [vmem:[#allocation25_spill] sm:$0xff] %v1885_v45  ;;  %2359 = vst [vmem:[#allocation26_spill] sm:$0xff] %v1891_v47  ;;  %v1893_v48 = vld [vmem:[#allocation7 + $0xa8] sm:$0xff]  ;;  %v1897_v49 = vld [vmem:[#allocation7 + $0xb8] sm:$0xff] }
  0x38   :  { %309 = vmatpush1.msra.mxu0 %v1843_v31  ;;  %239 = vmatprep.subr.mxu1 %v1845_v32  ;;  %2360 = vst [vmem:[#allocation27_spill] sm:$0xff] %v1897_v49  ;;  %v1899_v50 = vld [vmem:[#allocation7 + $0xa0] sm:$0xff]  ;;  %v1903_v51 = vld [vmem:[#allocation7 + $0xb0] sm:$0xff]  ;;  %v1911_v54 = vld [vmem:[#allocation7 + $0x78] sm:$0xff] }
  0x39   :  { %310 = vmatprep.subr.mxu0 %v1849_v33  ;;  %240 = vmatpush1.msra.mxu1 %v1851_v34  ;;  %2361 = vst [vmem:[#allocation28_spill] sm:$0xff] %v1903_v51  ;;  %v1905_v52 = vld [vmem:[#allocation7 + $0x80] sm:$0xff]  ;;  %v1909_v53 = vld [vmem:[#allocation7 + $0x90] sm:$0xff]  ;;  %v1915_v55 = vld [vmem:[#allocation7 + $0x88] sm:$0xff] }
  0x3a   :  { %311 = vmatpush1.msra.mxu0 %v1855_v35  ;;  %241 = vmatprep.subr.mxu1 %v1857_v36  ;;  %2362 = vst [vmem:[#allocation29_spill] sm:$0xff] %v1909_v53  ;;  %2363 = vst [vmem:[#allocation30_spill] sm:$0xff] %v1915_v55  ;;  %v1917_v56 = vld [vmem:[#allocation7 + $0x58] sm:$0xff]  ;;  %v1921_v57 = vld [vmem:[#allocation7 + $0x68] sm:$0xff] }
  0x3b   :  { %312 = vmatprep.subr.mxu0 %v1861_v37  ;;  %242 = vmatpush1.msra.mxu1 %v1863_v38  ;;  %2364 = vst [vmem:[#allocation31_spill] sm:$0xff] %v1921_v57  ;;  %v1929_v58 = vld [vmem:[#allocation7 + $0x50] sm:$0xff]  ;;  %v1931_v59 = vld [vmem:[#allocation7 + $0x60] sm:$0xff]  ;;  %v1941_v62 = vld [vmem:[#allocation7 + $0x28] sm:$0xff] }
  0x3c   :  { %313 = vmatpush1.msra.mxu0 %v1867_v39  ;;  %243 = vmatprep.subr.mxu1 %v1869_v40  ;;  %2365 = vst [vmem:[#allocation32_spill] sm:$0xff] %v1931_v59  ;;  %v1935_v60 = vld [vmem:[#allocation7 + $0x30] sm:$0xff]  ;;  %v1937_v61 = vld [vmem:[#allocation7 + $0x40] sm:$0xff]  ;;  %v1943_v63 = vld [vmem:[#allocation7 + $0x38] sm:$0xff] }
  0x3d   :  { %314 = vmatprep.subr.mxu0 %v1873_v41  ;;  %244 = vmatpush1.msra.mxu1 %v1875_v42  ;;  %2366 = vst [vmem:[#allocation33_spill] sm:$0xff] %v1937_v61  ;;  %2367 = vst [vmem:[#allocation34_spill] sm:$0xff] %v1943_v63  ;;  %v1947_v1 = vld [vmem:[#allocation7 + $0x8] sm:$0xff]  ;;  %v1949_v2 = vld [vmem:[#allocation7 + $0x18] sm:$0xff] }
  0x3e   :  { %315 = vmatpush1.msra.mxu0 %v1879_v43  ;;  %245 = vmatprep.subr.mxu1 %v1881_v44  ;;  %2368 = vst [vmem:[#allocation35_spill] sm:$0xff] %v1949_v2  ;;  %v1953_v3 = vld [vmem:[#allocation7] sm:$0xff] }
  0x3f   :  { %316 = vmatprep.subr.mxu0 %v1885_v45  ;;  %246 = vmatpush1.msra.mxu1 %v1887_v46 }
  0x40   :  { %317 = vmatpush1.msra.mxu0 %v1891_v47  ;;  %247 = vmatprep.subr.mxu1 %v1893_v48 }
  0x41   :  { %318 = vmatprep.subr.mxu0 %v1897_v49  ;;  %248 = vmatpush1.msra.mxu1 %v1899_v50 }
  0x42   :  { %319 = vmatpush1.msra.mxu0 %v1903_v51  ;;  %249 = vmatprep.subr.mxu1 %v1905_v52 }
  0x43   :  { %320 = vmatprep.subr.mxu0 %v1909_v53  ;;  %250 = vmatpush1.msra.mxu1 %v1911_v54 }
  0x44   :  { %321 = vmatpush1.msra.mxu0 %v1915_v55  ;;  %251 = vmatprep.subr.mxu1 %v1917_v56  ;;  %v1964_v55 = vld [vmem:[#allocation5 + $0x10] sm:$0xff] }
  0x45   :  { %322 = vmatprep.subr.mxu0 %v1921_v57  ;;  %360 = vmatprep.mubr.f32.mxu0 %v2287_v0  ;;  %v1955_v0 = vld [vmem:[#allocation7 + $0x10] sm:$0xff]  ;;  %2371 = vst [vmem:[#allocation37_spill] sm:$0xff] %v1964_v55 }
  0x46   :  { %252 = vmatpush1.msra.mxu1 %v1929_v58  ;;  %323 = vmatpush1.msra.mxu0 %v1931_v59  ;;  %2369 = vst [vmem:[#allocation36_spill] sm:$0xff] %v1955_v0 }
  0x47   :  { %253 = vmatprep.subr.mxu1 %v1935_v60  ;;  %324 = vmatprep.subr.mxu0 %v1937_v61  ;;  %v2370_v61 = vmov 0.0  }
  0x48   :  { %254 = vmatpush1.msra.mxu1 %v1941_v62  ;;  %325 = vmatpush1.msra.mxu0 %v1943_v63  ;;  %v138_v63 = vlaneseq }
  0x49   :  { %255 = vmatprep.subr.mxu1 %v1947_v1  ;;  %326 = vmatprep.subr.mxu0 %v1949_v2 }
  0x4a   :  { %256 = vmatpush1.msra.mxu1 %v1953_v3  ;;  %327 = vmatpush1.msra.mxu0 %v1955_v0  ;;  %v1961_v59 = vshrl.u32 %v138_v63, 7 }
  0x4b   :  { %1470 = vmatprep.subr.mxu0 %v2370_v61  ;;  %1480 = vmatprep.subr.mxu1 %v2370_v61 }
  0x4c   :  { %v140_v57 = vsub.s32 0, %v1961_v59 }
  0x4e   :  { %v141_v2 = vrot.slane %v1964_v55, %v140_v57 }
  0xeb   :  { %v212_v53 = vpop.f32.mrf.mxu0 }
  0xec   :  { %v213_v51 = vadd.f32 %v212_v53, %v141_v2  ;;  %v1729_v2 = vmov -1e+30  }
  0xed   :  { %v1469_v49 = vpop.f32.mrf.mxu0 }
  0xee   :  { %v216_v47 = vmax.f32 %v213_v51, 0.0  ;;  %v221_v49 = vand.u32 1, %v1961_v59 }
  0xf0   :  { %290 = vmatmul.mubr.f32.vlgmr.msra.gmra.mxu1 %v216_v47  ;;  %361 = vmatmul.mubr.f32.vlgmr.msra.gmra.mxu0 %v216_v47  ;;  %v220_v47 = vand.u32 127, %v138_v63 }
  0xf1   :  { %1472 = vmatprep.mubr.msk.f32.mxu0 %vm1728_vm0, %v2370_v61  ;;  %1512 = vmatprep.mubr.msk.f32.mxu1 %vm1728_vm0, %v2370_v61 }
  0xf2   :  { %v222_v51 = vand.u32 1, %v220_v47 }
  0xf4   :  { %vm223_vm2 = vcmp.eq.s32.totalorder %v221_v49, %v222_v51  ;;  %v1983_v51 = vld [vmem:[#allocation7 + $0x278] sm:$0xff] }
  0xf5   :  { %1481 = vmatpush3.msra.mxu1 %v1983_v51 }
  0xf6   :  { %1482 = vmatprep.subr.mxu1 %v2370_v61 }
 0x1b0   :  { %v291_v0 = vpop.f32.mrf.mxu1  ;;  %v362_v43 = vpop.f32.mrf.mxu0 }
 0x1b2   :  { %v293_v45 = vpop.f32.mrf.mxu1  ;;  %v1976_v53 = vpop.f32.mrf.mxu0 }
 0x1b3   :  { %1471 = vmatpush3.xpose.msra.mxu0 %v293_v45  ;;  %v1978_v45 = vsel %vm223_vm2, 0.0, %v1729_v2  ;;  %v1985_v2 = vld [vmem:[#allocation7 + $0x250] sm:$0xff] }
 0x1b4   :  { %1475 = vmatprep.subr.mxu0 %v2370_v61  ;;  %1483 = vmatpush3.msra.mxu1 %v1985_v2 }
 0x1b5   :  { %1484 = vmatprep.subr.mxu1 %v2370_v61 }
 0x1b6   :  { %1473 = vmatmul.mubr.f32.vlgmr.msra.gmra.mxu0 %v291_v0 }
 0x1b7   :  { %1476 = vmatpush3.msra.mxu0 %v362_v43  ;;  %1477 = vmatprep.mubr.msk.f32.mxu0 %vm1728_vm0, %v2370_v61 }
 0x1b8   :  { %601 = vmatprep.subr.mxu0 %v1765_v4 }
 0x276   :  { %v433_v57 = vpop.f32.mrf.mxu0 }
 0x277   :  { %v437_v55 = vmul.f32 0.088388346, %v433_v57  ;;  %v2005_v57 = vld [vmem:[#allocation7 + $0x188] sm:$0xff] }
 0x278   :  { %v1474_v41 = vpop.f32.mrf.mxu0  ;;  %2373 = vst [vmem:[#allocation39_spill] sm:$0xff] %v2005_v57 }
 0x279   :  { %v438_v0 = vadd.f32 %v437_v55, %v1978_v45  ;;  %v1989_v41 = vld [vmem:[#allocation7 + $0x228] sm:$0xff]  ;;  %v2001_v55 = vld [vmem:[#allocation7 + $0x1b0] sm:$0xff] }
 0x27a   :  { %1485 = vmatpush3.msra.mxu1 %v1989_v41  ;;  %2372 = vst [vmem:[#allocation38_spill] sm:$0xff] %v2001_v55 }
 0x27b   :  { %v440_v43 = vsel %vm439_vm3, %v438_v0, -inf  ;;  %1486 = vmatprep.subr.mxu1 %v2370_v61 }
 0x27c   :  { %441 = vmax.xlane.f32.xlu0 %v440_v43  ;;  %v2013_v43 = vld [vmem:[#allocation7 + $0x138] sm:$0xff] }
 0x27d   :  { %2375 = vst [vmem:[#allocation41_spill] sm:$0xff] %v2013_v43 }
 0x305   :  { %v442_v4 = vpop.xlane.xlu0 %441 }
 0x306   :  { %v443_v63 = vsub.f32 %v438_v0, %v442_v4  ;;  %v1993_v4 = vld [vmem:[#allocation7 + $0x200] sm:$0xff] }
 0x307   :  { %1487 = vmatpush3.msra.mxu1 %v1993_v4  ;;  %v2009_v0 = vld [vmem:[#allocation7 + $0x160] sm:$0xff] }
 0x308   :  { %v444_v39 = vmul.f32 1.442695, %v443_v63  ;;  %1488 = vmatprep.subr.mxu1 %v2370_v61  ;;  %2374 = vst [vmem:[#allocation40_spill] sm:$0xff] %v2009_v0  ;;  %v2017_v63 = vld [vmem:[#allocation7 + $0x110] sm:$0xff] }
 0x309   :  { %2376 = vst [vmem:[#allocation42_spill] sm:$0xff] %v2017_v63 }
 0x30a   :  { %1618 = vpow2.f32 %v444_v39  ;;  %v1997_v39 = vld [vmem:[#allocation7 + $0x1d8] sm:$0xff] }
 0x30b   :  { %1489 = vmatpush3.msra.mxu1 %v1997_v39 }
 0x30c   :  { %1490 = vmatprep.subr.mxu1 %v2370_v61 }
 0x30d   :  { %1491 = vmatpush3.msra.mxu1 %v2001_v55 }
 0x30e   :  { %1492 = vmatprep.subr.mxu1 %v2370_v61 }
 0x30f   :  { %1493 = vmatpush3.msra.mxu1 %v2005_v57  ;;  %v2025_v57 = vld [vmem:[#allocation7 + $0xc0] sm:$0xff] }
 0x310   :  { %1494 = vmatprep.subr.mxu1 %v2370_v61  ;;  %2378 = vst [vmem:[#allocation44_spill] sm:$0xff] %v2025_v57 }
 0x311   :  { %1495 = vmatpush3.msra.mxu1 %v2009_v0  ;;  %v2029_v0 = vld [vmem:[#allocation7 + $0x98] sm:$0xff] }
 0x312   :  { %1496 = vmatprep.subr.mxu1 %v2370_v61 }
 0x313   :  { %1497 = vmatpush3.msra.mxu1 %v2013_v43  ;;  %v2033_v43 = vld [vmem:[#allocation7 + $0x70] sm:$0xff] }
 0x314   :  { %1498 = vmatprep.subr.mxu1 %v2370_v61 }
 0x315   :  { %1499 = vmatpush3.msra.mxu1 %v2017_v63  ;;  %v2037_v63 = vld [vmem:[#allocation7 + $0x48] sm:$0xff] }
 0x316   :  { %1500 = vmatprep.subr.mxu1 %v2370_v61 }
 0x317   :  { %v1619_v47 = vpop.eup %1618 }
 0x318   :  { %v446_v49 = vsel %vm439_vm3, %v1619_v47, 0.0 }
 0x319   :  { %447 = vadd.xlane.f32.xlu0 %v446_v49  ;;  %v2021_v49 = vld [vmem:[#allocation7 + $0xe8] sm:$0xff] }
 0x31a   :  { %2377 = vst [vmem:[#allocation43_spill] sm:$0xff] %v2021_v49  ;;  %1501 = vmatpush3.msra.mxu1 %v2021_v49 }
 0x31b   :  { %1502 = vmatprep.subr.mxu1 %v2370_v61 }
 0x31c   :  { %1503 = vmatpush3.msra.mxu1 %v2025_v57 }
 0x31d   :  { %1504 = vmatprep.subr.mxu1 %v2370_v61 }
 0x31e   :  { %1505 = vmatpush3.msra.mxu1 %v2029_v0 }
 0x31f   :  { %1506 = vmatprep.subr.mxu1 %v2370_v61 }
 0x320   :  { %1507 = vmatpush3.msra.mxu1 %v2033_v43 }
 0x321   :  { %1508 = vmatprep.subr.mxu1 %v2370_v61 }
 0x322   :  { %1509 = vmatpush3.msra.mxu1 %v2037_v63 }
 0x323   :  { %1510 = vmatprep.subr.mxu1 %v2370_v61 }
 0x3a2   :  { %v448_v49 = vpop.xlane.xlu0 %447 }
 0x3a3   :  { %1620 = vrcp.f32 %v448_v49  ;;  %v2379_v49 = vld [vmem:[#allocation22_spill] sm:$0xff] }
 0x3b0   :  { %v1621_v57 = vpop.eup %1620 }
 0x3b1   :  { %v450_v55 = vmul.f32 %v1621_v57, %v1619_v47  ;;  %v2077_v47 = vld [vmem:[#allocation7 + $0x20] sm:$0xff] }
 0x3b2   :  { %1511 = vmatpush3.msra.mxu1 %v2077_v47 }
 0x3b3   :  { %1478 = vmatmul.mubr.msk.f32.vlgmr.msra.gmra.mxu0 %vm439_vm3, %v450_v55  ;;  %672 = vmatprep.subr.mxu1 %v1767_v5 }
 0x3b4   :  { %602 = vmatpush1.msra.mxu0 %v1769_v6  ;;  %665 = vmatprep.mubr.f32.mxu0 %v2370_v61 }
 0x3b5   :  { %603 = vmatprep.subr.mxu0 %v1775_v8 }
 0x3b6   :  { %604 = vmatpush1.msra.mxu0 %v1780_v10 }
 0x3b7   :  { %605 = vmatprep.subr.mxu0 %v1785_v12 }
 0x3b8   :  { %606 = vmatpush1.msra.mxu0 %v1791_v14 }
 0x3b9   :  { %607 = vmatprep.subr.mxu0 %v1797_v16 }
 0x3ba   :  { %608 = vmatpush1.msra.mxu0 %v1803_v18 }
 0x3bb   :  { %609 = vmatprep.subr.mxu0 %v1809_v20 }
 0x3bc   :  { %610 = vmatpush1.msra.mxu0 %v1815_v22 }
 0x3bd   :  { %611 = vmatprep.subr.mxu0 %v1821_v24 }
 0x3be   :  { %612 = vmatpush1.msra.mxu0 %v1827_v26 }
 0x3bf   :  { %613 = vmatprep.subr.mxu0 %v1833_v28 }
 0x3c0   :  { %614 = vmatpush1.msra.mxu0 %v1839_v30 }
 0x3c1   :  { %615 = vmatprep.subr.mxu0 %v1845_v32 }
 0x3c2   :  { %616 = vmatpush1.msra.mxu0 %v1851_v34 }
 0x3c3   :  { %617 = vmatprep.subr.mxu0 %v1857_v36 }
 0x3c4   :  { %618 = vmatpush1.msra.mxu0 %v1863_v38 }
 0x3c5   :  { %619 = vmatprep.subr.mxu0 %v1869_v40 }
 0x3c6   :  { %620 = vmatpush1.msra.mxu0 %v1875_v42 }
 0x3c7   :  { %621 = vmatprep.subr.mxu0 %v1881_v44 }
 0x3c8   :  { %622 = vmatpush1.msra.mxu0 %v1887_v46 }
 0x3c9   :  { %623 = vmatprep.subr.mxu0 %v1893_v48 }
 0x3ca   :  { %624 = vmatpush1.msra.mxu0 %v1899_v50 }
 0x3cb   :  { %625 = vmatprep.subr.mxu0 %v1905_v52 }
 0x3cc   :  { %626 = vmatpush1.msra.mxu0 %v1911_v54 }
 0x3cd   :  { %627 = vmatprep.subr.mxu0 %v1917_v56 }
 0x3ce   :  { %628 = vmatpush1.msra.mxu0 %v1929_v58 }
 0x3cf   :  { %629 = vmatprep.subr.mxu0 %v1935_v60 }
 0x3d0   :  { %630 = vmatpush1.msra.mxu0 %v1941_v62 }
 0x3d1   :  { %631 = vmatprep.subr.mxu0 %v1947_v1 }
 0x3d2   :  { %632 = vmatpush1.msra.mxu0 %v1953_v3 }
 0x3d3   :  { %1515 = vmatprep.subr.mxu0 %v2370_v61 }
 0x473   :  { %v520_v55 = vpop.f32.mrf.mxu0 }
 0x474   :  { %1513 = vmatmul.mubr.f32.vlgmr.msra.gmra.mxu1 %v520_v55  ;;  %v2380_v55 = vld [vmem:[#allocation23_spill] sm:$0xff] }
 0x475   :  { %v1479_v57 = vpop.f32.mrf.mxu0  ;;  %673 = vmatpush1.msra.mxu1 %v1773_v7  ;;  %736 = vmatprep.mubr.f32.mxu1 %v2370_v61 }
 0x476   :  { %674 = vmatprep.subr.mxu1 %v1778_v9  ;;  %v2381_v57 = vld [vmem:[#allocation24_spill] sm:$0xff] }
 0x477   :  { %675 = vmatpush1.msra.mxu1 %v1783_v11 }
 0x478   :  { %676 = vmatprep.subr.mxu1 %v1789_v13 }
 0x479   :  { %677 = vmatpush1.msra.mxu1 %v1795_v15 }
 0x47a   :  { %678 = vmatprep.subr.mxu1 %v1801_v17 }
 0x47b   :  { %679 = vmatpush1.msra.mxu1 %v1807_v19 }
 0x47c   :  { %680 = vmatprep.subr.mxu1 %v1813_v21 }
 0x47d   :  { %681 = vmatpush1.msra.mxu1 %v1819_v23  ;;  %v2382_v23 = vld [vmem:[#allocation25_spill] sm:$0xff] }
 0x47e   :  { %682 = vmatprep.subr.mxu1 %v1825_v25  ;;  %v2383_v25 = vld [vmem:[#allocation26_spill] sm:$0xff] }
 0x47f   :  { %683 = vmatpush1.msra.mxu1 %v1831_v27  ;;  %v2384_v27 = vld [vmem:[#allocation27_spill] sm:$0xff] }
 0x480   :  { %684 = vmatprep.subr.mxu1 %v1837_v29  ;;  %v2385_v29 = vld [vmem:[#allocation28_spill] sm:$0xff] }
 0x481   :  { %685 = vmatpush1.msra.mxu1 %v1843_v31  ;;  %v2386_v31 = vld [vmem:[#allocation29_spill] sm:$0xff] }
 0x482   :  { %686 = vmatprep.subr.mxu1 %v1849_v33  ;;  %v2387_v33 = vld [vmem:[#allocation30_spill] sm:$0xff] }
 0x483   :  { %687 = vmatpush1.msra.mxu1 %v1855_v35  ;;  %v2388_v35 = vld [vmem:[#allocation31_spill] sm:$0xff] }
 0x484   :  { %688 = vmatprep.subr.mxu1 %v1861_v37  ;;  %v2389_v37 = vld [vmem:[#allocation32_spill] sm:$0xff] }
 0x485   :  { %689 = vmatpush1.msra.mxu1 %v2379_v49  ;;  %v2390_v49 = vld [vmem:[#allocation33_spill] sm:$0xff] }
 0x486   :  { %690 = vmatprep.subr.mxu1 %v2380_v55  ;;  %v2391_v55 = vld [vmem:[#allocation34_spill] sm:$0xff] }
 0x487   :  { %691 = vmatpush1.msra.mxu1 %v2381_v57  ;;  %v2392_v57 = vld [vmem:[#allocation35_spill] sm:$0xff] }
 0x488   :  { %692 = vmatprep.subr.mxu1 %v2382_v23  ;;  %v2393_v23 = vld [vmem:[#allocation36_spill] sm:$0xff] }
 0x489   :  { %693 = vmatpush1.msra.mxu1 %v2383_v25  ;;  %v2394_v25 = vld [vmem:[#allocation12_spill] sm:$0xff] }
 0x48a   :  { %694 = vmatprep.subr.mxu1 %v2384_v27  ;;  %v2395_v27 = vld [vmem:[#allocation37_spill] sm:$0xff] }
 0x48b   :  { %695 = vmatpush1.msra.mxu1 %v2385_v29  ;;  %v597_v29 = vsub.s32 1, %v1961_v59 }
 0x48c   :  { %696 = vmatprep.subr.mxu1 %v2386_v31 }
 0x48d   :  { %697 = vmatpush1.msra.mxu1 %v2387_v33  ;;  %v2116_v31 = vrot.slane %v2395_v27, %v597_v29 }
 0x48e   :  { %698 = vmatprep.subr.mxu1 %v2388_v35 }
 0x48f   :  { %699 = vmatpush1.msra.mxu1 %v2389_v37 }
 0x490   :  { %700 = vmatprep.subr.mxu1 %v2390_v49 }
 0x491   :  { %701 = vmatpush1.msra.mxu1 %v2391_v55 }
 0x492   :  { %702 = vmatprep.subr.mxu1 %v2392_v57 }
 0x493   :  { %703 = vmatpush1.msra.mxu1 %v2393_v23 }
 0x494   :  { %972 = vmatprep.subr.mxu1 %v2394_v25 }
 0x534   :  { %v590_v33 = vpop.f32.mrf.mxu1 }
 0x535   :  { %v594_v35 = vadd.f32 %v590_v33, %v1976_v53  ;;  %v2397_v33 = vld [vmem:[#allocation39_spill] sm:$0xff]  ;;  %v2423_v53 = vld [vmem:[#allocation33_spill] sm:$0xff] }
 0x536   :  { %v1514_v21 = vpop.f32.mrf.mxu1 }
 0x537   :  { %v599_v37 = vadd.f32 %v2116_v31, %v594_v35  ;;  %v2399_v35 = vld [vmem:[#allocation41_spill] sm:$0xff] }
 0x539   :  { %v600_v49 = vmax.f32 %v599_v37, 0.0  ;;  %v2401_v37 = vld [vmem:[#allocation43_spill] sm:$0xff] }
 0x53b   :  { %666 = vmatmul.mubr.f32.vlgmr.msra.gmra.mxu0 %v600_v49  ;;  %737 = vmatmul.mubr.f32.vlgmr.msra.gmra.mxu1 %v600_v49 }
 0x53c   :  { %1517 = vmatprep.mubr.msk.f32.mxu0 %vm1728_vm0, %v2370_v61  ;;  %973 = vmatpush1.msra.mxu1 %v1769_v6 }
 0x53d   :  { %974 = vmatprep.subr.mxu1 %v1775_v8  ;;  %1036 = vmatprep.mubr.f32.mxu1 %v2370_v61 }
 0x53e   :  { %975 = vmatpush1.msra.mxu1 %v1780_v10 }
 0x53f   :  { %976 = vmatprep.subr.mxu1 %v1785_v12 }
 0x540   :  { %977 = vmatpush1.msra.mxu1 %v1791_v14 }
 0x541   :  { %978 = vmatprep.subr.mxu1 %v1797_v16 }
 0x542   :  { %979 = vmatpush1.msra.mxu1 %v1803_v18 }
 0x543   :  { %980 = vmatprep.subr.mxu1 %v1809_v20 }
 0x544   :  { %981 = vmatpush1.msra.mxu1 %v1815_v22 }
 0x545   :  { %982 = vmatprep.subr.mxu1 %v1821_v24 }
 0x546   :  { %983 = vmatpush1.msra.mxu1 %v1827_v26 }
 0x547   :  { %984 = vmatprep.subr.mxu1 %v1833_v28 }
 0x548   :  { %985 = vmatpush1.msra.mxu1 %v1839_v30 }
 0x549   :  { %986 = vmatprep.subr.mxu1 %v1845_v32  ;;  %v2396_v32 = vld [vmem:[#allocation38_spill] sm:$0xff] }
 0x54a   :  { %987 = vmatpush1.msra.mxu1 %v1851_v34  ;;  %v2398_v34 = vld [vmem:[#allocation40_spill] sm:$0xff] }
 0x54b   :  { %988 = vmatprep.subr.mxu1 %v1857_v36  ;;  %v2400_v36 = vld [vmem:[#allocation42_spill] sm:$0xff] }
 0x54c   :  { %989 = vmatpush1.msra.mxu1 %v1863_v38  ;;  %v2402_v38 = vld [vmem:[#allocation44_spill] sm:$0xff] }
 0x54d   :  { %990 = vmatprep.subr.mxu1 %v1869_v40 }
 0x54e   :  { %991 = vmatpush1.msra.mxu1 %v1875_v42 }
 0x54f   :  { %992 = vmatprep.subr.mxu1 %v1881_v44  ;;  %v2404_v44 = vld [vmem:[#allocation14_spill] sm:$0xff] }
 0x550   :  { %993 = vmatpush1.msra.mxu1 %v1887_v46  ;;  %v2405_v46 = vld [vmem:[#allocation15_spill] sm:$0xff] }
 0x551   :  { %994 = vmatprep.subr.mxu1 %v1893_v48  ;;  %v2407_v48 = vld [vmem:[#allocation17_spill] sm:$0xff] }
 0x552   :  { %995 = vmatpush1.msra.mxu1 %v1899_v50  ;;  %v2414_v50 = vld [vmem:[#allocation24_spill] sm:$0xff] }
 0x553   :  { %996 = vmatprep.subr.mxu1 %v1905_v52  ;;  %v2415_v52 = vld [vmem:[#allocation25_spill] sm:$0xff] }
 0x554   :  { %997 = vmatpush1.msra.mxu1 %v1911_v54  ;;  %v2416_v54 = vld [vmem:[#allocation26_spill] sm:$0xff] }
 0x555   :  { %998 = vmatprep.subr.mxu1 %v1917_v56  ;;  %v2417_v56 = vld [vmem:[#allocation27_spill] sm:$0xff] }
 0x556   :  { %999 = vmatpush1.msra.mxu1 %v1929_v58  ;;  %v2418_v58 = vld [vmem:[#allocation28_spill] sm:$0xff] }
 0x557   :  { %1000 = vmatprep.subr.mxu1 %v1935_v60  ;;  %v2419_v60 = vld [vmem:[#allocation29_spill] sm:$0xff] }
 0x558   :  { %1001 = vmatpush1.msra.mxu1 %v1941_v62  ;;  %v2420_v62 = vld [vmem:[#allocation30_spill] sm:$0xff] }
 0x559   :  { %1002 = vmatprep.subr.mxu1 %v1947_v1  ;;  %v2421_v1 = vld [vmem:[#allocation31_spill] sm:$0xff] }
 0x55a   :  { %1003 = vmatpush1.msra.mxu1 %v1953_v3  ;;  %v2422_v3 = vld [vmem:[#allocation32_spill] sm:$0xff] }
 0x55b   :  { %1570 = vmatprep.subr.mxu1 %v2370_v61 }
 0x5fb   :  { %v667_v6 = vpop.f32.mrf.mxu0  ;;  %v738_v10 = vpop.f32.mrf.mxu1 }
 0x5fd   :  { %v669_v8 = vpop.f32.mrf.mxu0  ;;  %v740_v49 = vpop.f32.mrf.mxu1 }
 0x5fe   :  { %1516 = vmatpush3.xpose.msra.mxu0 %v669_v8 }
 0x5ff   :  { %1520 = vmatprep.subr.mxu0 %v2370_v61 }
 0x601   :  { %1518 = vmatmul.mubr.f32.vlgmr.msra.gmra.mxu0 %v667_v6 }
 0x602   :  { %1521 = vmatpush3.msra.mxu0 %v738_v10  ;;  %1522 = vmatprep.mubr.msk.f32.mxu0 %vm1728_vm0, %v2370_v61 }
 0x603   :  { %1525 = vmatprep.subr.mxu0 %v2370_v61 }
 0x6c1   :  { %v809_v12 = vpop.f32.mrf.mxu0 }
 0x6c2   :  { %v813_v14 = vmul.f32 0.088388346, %v809_v12 }
 0x6c3   :  { %v1519_v16 = vpop.f32.mrf.mxu0 }
 0x6c4   :  { %v814_v18 = vadd.f32 %v813_v14, %v1978_v45 }
 0x6c6   :  { %v815_v20 = vsel %vm439_vm3, %v814_v18, -inf }
 0x6c7   :  { %816 = vmax.xlane.f32.xlu1 %v815_v20 }
 0x750   :  { %v817_v21 = vpop.xlane.xlu1 %816 }
 0x751   :  { %v818_v22 = vsub.f32 %v814_v18, %v817_v21 }
 0x753   :  { %v819_v24 = vmul.f32 1.442695, %v818_v22 }
 0x755   :  { %1622 = vpow2.f32 %v819_v24 }
 0x762   :  { %v1623_v25 = vpop.eup %1622 }
 0x763   :  { %v821_v26 = vsel %vm439_vm3, %v1623_v25, 0.0 }
 0x764   :  { %822 = vadd.xlane.f32.xlu1 %v821_v26 }
 0x7ed   :  { %v823_v28 = vpop.xlane.xlu1 %822 }
 0x7ee   :  { %1624 = vrcp.f32 %v823_v28 }
 0x7fb   :  { %v1625_v29 = vpop.eup %1624 }
 0x7fc   :  { %v825_v30 = vmul.f32 %v1625_v29, %v1623_v25 }
 0x7fe   :  { %1523 = vmatmul.mubr.msk.f32.vlgmr.msra.gmra.mxu0 %vm439_vm3, %v825_v30 }
 0x7ff   :  { %1526 = vmatpush3.msra.mxu0 %v1983_v51  ;;  %1557 = vmatprep.mubr.msk.f32.mxu0 %vm1728_vm0, %v2370_v61 }
 0x800   :  { %1527 = vmatprep.subr.mxu0 %v2370_v61 }
 0x801   :  { %1528 = vmatpush3.msra.mxu0 %v1985_v2 }
 0x802   :  { %1529 = vmatprep.subr.mxu0 %v2370_v61 }
 0x803   :  { %1530 = vmatpush3.msra.mxu0 %v1989_v41 }
 0x804   :  { %1531 = vmatprep.subr.mxu0 %v2370_v61 }
 0x805   :  { %1532 = vmatpush3.msra.mxu0 %v1993_v4 }
 0x806   :  { %1533 = vmatprep.subr.mxu0 %v2370_v61 }
 0x807   :  { %1534 = vmatpush3.msra.mxu0 %v1997_v39 }
 0x808   :  { %1535 = vmatprep.subr.mxu0 %v2370_v61 }
 0x809   :  { %1536 = vmatpush3.msra.mxu0 %v2396_v32 }
 0x80a   :  { %1537 = vmatprep.subr.mxu0 %v2370_v61 }
 0x80b   :  { %1538 = vmatpush3.msra.mxu0 %v2397_v33 }
 0x80c   :  { %1539 = vmatprep.subr.mxu0 %v2370_v61 }
 0x80d   :  { %1540 = vmatpush3.msra.mxu0 %v2398_v34 }
 0x80e   :  { %1541 = vmatprep.subr.mxu0 %v2370_v61 }
 0x80f   :  { %1542 = vmatpush3.msra.mxu0 %v2399_v35 }
 0x810   :  { %1543 = vmatprep.subr.mxu0 %v2370_v61 }
 0x811   :  { %1544 = vmatpush3.msra.mxu0 %v2400_v36 }
 0x812   :  { %1545 = vmatprep.subr.mxu0 %v2370_v61 }
 0x813   :  { %1546 = vmatpush3.msra.mxu0 %v2401_v37 }
 0x814   :  { %1547 = vmatprep.subr.mxu0 %v2370_v61 }
 0x815   :  { %1548 = vmatpush3.msra.mxu0 %v2402_v38 }
 0x816   :  { %1549 = vmatprep.subr.mxu0 %v2370_v61 }
 0x817   :  { %1550 = vmatpush3.msra.mxu0 %v2029_v0 }
 0x818   :  { %1551 = vmatprep.subr.mxu0 %v2370_v61 }
 0x819   :  { %1552 = vmatpush3.msra.mxu0 %v2033_v43 }
 0x81a   :  { %1553 = vmatprep.subr.mxu0 %v2370_v61 }
 0x81b   :  { %1554 = vmatpush3.msra.mxu0 %v2037_v63 }
 0x81c   :  { %1555 = vmatprep.subr.mxu0 %v2370_v61 }
 0x81d   :  { %1556 = vmatpush3.msra.mxu0 %v2077_v47 }
 0x81e   :  { %1043 = vmatprep.subr.mxu0 %v1767_v5  ;;  %v2403_v5 = vld [vmem:[#allocation13_spill] sm:$0xff] }
 0x8be   :  { %v895_v40 = vpop.f32.mrf.mxu0 }
 0x8bf   :  { %1558 = vmatmul.mubr.f32.vlgmr.msra.gmra.mxu0 %v895_v40 }
 0x8c0   :  { %v1524_v42 = vpop.f32.mrf.mxu0  ;;  %1044 = vmatpush1.msra.mxu0 %v1773_v7  ;;  %1107 = vmatprep.mubr.f32.mxu0 %v2370_v61  ;;  %v2406_v7 = vld [vmem:[#allocation16_spill] sm:$0xff] }
 0x8c1   :  { %1045 = vmatprep.subr.mxu0 %v1778_v9  ;;  %v2408_v9 = vld [vmem:[#allocation18_spill] sm:$0xff] }
 0x8c2   :  { %1046 = vmatpush1.msra.mxu0 %v1783_v11  ;;  %v2409_v11 = vld [vmem:[#allocation19_spill] sm:$0xff] }
 0x8c3   :  { %1047 = vmatprep.subr.mxu0 %v1789_v13  ;;  %v2410_v13 = vld [vmem:[#allocation20_spill] sm:$0xff] }
 0x8c4   :  { %1048 = vmatpush1.msra.mxu0 %v1795_v15  ;;  %v2411_v15 = vld [vmem:[#allocation21_spill] sm:$0xff] }
 0x8c5   :  { %1049 = vmatprep.subr.mxu0 %v1801_v17  ;;  %v2412_v17 = vld [vmem:[#allocation22_spill] sm:$0xff] }
 0x8c6   :  { %1050 = vmatpush1.msra.mxu0 %v1807_v19  ;;  %v2413_v19 = vld [vmem:[#allocation23_spill] sm:$0xff] }
 0x8c7   :  { %1051 = vmatprep.subr.mxu0 %v2403_v5 }
 0x8c8   :  { %1052 = vmatpush1.msra.mxu0 %v2404_v44 }
 0x8c9   :  { %1053 = vmatprep.subr.mxu0 %v2405_v46 }
 0x8ca   :  { %1054 = vmatpush1.msra.mxu0 %v2406_v7 }
 0x8cb   :  { %1055 = vmatprep.subr.mxu0 %v2407_v48 }
 0x8cc   :  { %1056 = vmatpush1.msra.mxu0 %v2408_v9 }
 0x8cd   :  { %1057 = vmatprep.subr.mxu0 %v2409_v11 }
 0x8ce   :  { %1058 = vmatpush1.msra.mxu0 %v2410_v13 }
 0x8cf   :  { %1059 = vmatprep.subr.mxu0 %v2411_v15 }
 0x8d0   :  { %1060 = vmatpush1.msra.mxu0 %v2412_v17 }
 0x8d1   :  { %1061 = vmatprep.subr.mxu0 %v2413_v19 }
 0x8d2   :  { %1062 = vmatpush1.msra.mxu0 %v2414_v50 }
 0x8d3   :  { %1063 = vmatprep.subr.mxu0 %v2415_v52 }
 0x8d4   :  { %1064 = vmatpush1.msra.mxu0 %v2416_v54 }
 0x8d5   :  { %1065 = vmatprep.subr.mxu0 %v2417_v56 }
 0x8d6   :  { %1066 = vmatpush1.msra.mxu0 %v2418_v58 }
 0x8d7   :  { %1067 = vmatprep.subr.mxu0 %v2419_v60 }
 0x8d8   :  { %1068 = vmatpush1.msra.mxu0 %v2420_v62 }
 0x8d9   :  { %1069 = vmatprep.subr.mxu0 %v2421_v1 }
 0x8da   :  { %1070 = vmatpush1.msra.mxu0 %v2422_v3 }
 0x8db   :  { %1071 = vmatprep.subr.mxu0 %v2423_v53 }
 0x8dc   :  { %1072 = vmatpush1.msra.mxu0 %v2391_v55 }
 0x8dd   :  { %1073 = vmatprep.subr.mxu0 %v2392_v57 }
 0x8de   :  { %1074 = vmatpush1.msra.mxu0 %v2393_v23 }
 0x8df   :  { %1560 = vmatprep.subr.mxu0 %v2370_v61 }
 0x97f   :  { %v965_v6 = vpop.f32.mrf.mxu0 }
 0x980   :  { %v969_v8 = vadd.f32 %v965_v6, %v740_v49 }
 0x981   :  { %v1559_v10 = vpop.f32.mrf.mxu0 }
 0x982   :  { %v970_v12 = vadd.f32 %v969_v8, %v2116_v31 }
 0x984   :  { %v971_v14 = vmax.f32 %v970_v12, 0.0 }
 0x986   :  { %1037 = vmatmul.mubr.f32.vlgmr.msra.gmra.mxu1 %v971_v14  ;;  %1108 = vmatmul.mubr.f32.vlgmr.msra.gmra.mxu0 %v971_v14 }
 0x987   :  { %1562 = vmatprep.mubr.msk.f32.mxu0 %vm1728_vm0, %v2370_v61  ;;  %1571 = vmatpush3.msra.mxu1 %v1983_v51 }
 0x988   :  { %1572 = vmatprep.subr.mxu1 %v2370_v61  ;;  %1602 = vmatprep.mubr.msk.f32.mxu1 %vm1728_vm0, %v2370_v61 }
 0x989   :  { %1573 = vmatpush3.msra.mxu1 %v1985_v2 }
 0x98a   :  { %1574 = vmatprep.subr.mxu1 %v2370_v61 }
 0x98b   :  { %1575 = vmatpush3.msra.mxu1 %v1989_v41 }
 0x98c   :  { %1576 = vmatprep.subr.mxu1 %v2370_v61 }
 0x98d   :  { %1577 = vmatpush3.msra.mxu1 %v1993_v4 }
 0x98e   :  { %1578 = vmatprep.subr.mxu1 %v2370_v61 }
 0x98f   :  { %1579 = vmatpush3.msra.mxu1 %v1997_v39  ;;  %v1345_v39 = vsub.s32 2, %v1961_v59 }
 0x990   :  { %1580 = vmatprep.subr.mxu1 %v2370_v61 }
 0x991   :  { %1581 = vmatpush3.msra.mxu1 %v2396_v32  ;;  %v1730_v32 = vmov 0  }
 0x992   :  { %1582 = vmatprep.subr.mxu1 %v2370_v61  ;;  %1617 = vset.pattern.permute.xlu0 %v1730_v32 }
 0x993   :  { %1583 = vmatpush3.msra.mxu1 %v2397_v33  ;;  %v1360_v33 = vsub.s32 4, %v1961_v59 }
 0x994   :  { %1584 = vmatprep.subr.mxu1 %v2370_v61 }
 0x995   :  { %1585 = vmatpush3.msra.mxu1 %v2398_v34  ;;  %v1361_v34 = vrot.slane %v2395_v27, %v1360_v33 }
 0x996   :  { %1586 = vmatprep.subr.mxu1 %v2370_v61 }
 0x997   :  { %1587 = vmatpush3.msra.mxu1 %v2399_v35 }
 0x998   :  { %1588 = vmatprep.subr.mxu1 %v2370_v61 }
 0x999   :  { %1589 = vmatpush3.msra.mxu1 %v2400_v36 }
 0x99a   :  { %1590 = vmatprep.subr.mxu1 %v2370_v61 }
 0x99b   :  { %1591 = vmatpush3.msra.mxu1 %v2401_v37 }
 0x99c   :  { %1592 = vmatprep.subr.mxu1 %v2370_v61 }
 0x99d   :  { %1593 = vmatpush3.msra.mxu1 %v2402_v38 }
 0x99e   :  { %1594 = vmatprep.subr.mxu1 %v2370_v61 }
 0x99f   :  { %1595 = vmatpush3.msra.mxu1 %v2029_v0 }
 0x9a0   :  { %1596 = vmatprep.subr.mxu1 %v2370_v61 }
 0x9a1   :  { %1597 = vmatpush3.msra.mxu1 %v2033_v43 }
 0x9a2   :  { %1598 = vmatprep.subr.mxu1 %v2370_v61 }
 0x9a3   :  { %1599 = vmatpush3.msra.mxu1 %v2037_v63 }
 0x9a4   :  { %1600 = vmatprep.subr.mxu1 %v2370_v61 }
 0x9a5   :  { %1601 = vmatpush3.msra.mxu1 %v2077_v47  ;;  %v1346_v47 = vrot.slane %v2395_v27, %v1345_v39 }
 0x9a7   :  { %v1347_v57 = vmul.f32 %v1346_v47, %v971_v14 }
 0xa46   :  { %v1038_v23 = vpop.f32.mrf.mxu1  ;;  %v1109_v2 = vpop.f32.mrf.mxu0 }
 0xa48   :  { %v1040_v51 = vpop.f32.mrf.mxu1  ;;  %v1111_v41 = vpop.f32.mrf.mxu0 }
 0xa49   :  { %1561 = vmatpush3.xpose.msra.mxu0 %v1040_v51 }
 0xa4a   :  { %1565 = vmatprep.subr.mxu0 %v2370_v61 }
 0xa4c   :  { %1563 = vmatmul.mubr.f32.vlgmr.msra.gmra.mxu0 %v1038_v23 }
 0xa4d   :  { %1566 = vmatpush3.msra.mxu0 %v1109_v2  ;;  %1567 = vmatprep.mubr.msk.f32.mxu0 %vm1728_vm0, %v2370_v61 }
 0xb0c   :  { %v1180_v4 = vpop.f32.mrf.mxu0 }
 0xb0d   :  { %v1184_v0 = vmul.f32 0.088388346, %v1180_v4 }
 0xb0e   :  { %v1564_v43 = vpop.f32.mrf.mxu0 }
 0xb0f   :  { %v1185_v63 = vadd.f32 %v1184_v0, %v1978_v45  ;;  %v1352_v45 = vsub.s32 3, %v1961_v59 }
 0xb11   :  { %v1186_v55 = vsel %vm439_vm3, %v1185_v63, -inf  ;;  %v1353_v26 = vrot.slane %v2395_v27, %v1352_v45 }
 0xb12   :  { %1187 = vmax.xlane.f32.xlu0 %v1186_v55 }
 0xb16   :  { %1348 = vadd.xlane.f32.xlu0 %v1347_v57 }
 0xb9b   :  { %v1188_v16 = vpop.xlane.xlu0 %1187 }
 0xb9c   :  { %v1189_v18 = vsub.f32 %v1185_v63, %v1188_v16 }
 0xb9e   :  { %v1190_v20 = vmul.f32 1.442695, %v1189_v18 }
 0xb9f   :  { %v1349_v35 = vpop.xlane.xlu0 %1348 }
 0xba0   :  { %1626 = vpow2.f32 %v1190_v20 }
 0xbad   :  { %v1627_v61 = vpop.eup %1626 }
 0xbae   :  { %v1192_v21 = vsel %vm439_vm3, %v1627_v61, 0.0 }
 0xbaf   :  { %1193 = vadd.xlane.f32.xlu1 %v1192_v21 }
 0xc38   :  { %v1194_v22 = vpop.xlane.xlu1 %1193 }
 0xc39   :  { %1628 = vrcp.f32 %v1194_v22 }
 0xc46   :  { %v1629_v24 = vpop.eup %1628 }
 0xc47   :  { %v1196_v25 = vmul.f32 %v1629_v24, %v1627_v61 }
 0xc49   :  { %1568 = vmatmul.mubr.msk.f32.vlgmr.msra.gmra.mxu0 %vm439_vm3, %v1196_v25 }
 0xd09   :  { %v1266_v28 = vpop.f32.mrf.mxu0 }
 0xd0a   :  { %1603 = vmatmul.mubr.f32.vlgmr.msra.gmra.mxu1 %v1266_v28  ;;  %v1354_v29 = vmul.f32 %v1353_v26, %v1266_v28 }
 0xd0b   :  { %v1569_v30 = vpop.f32.mrf.mxu0 }
 0xd0c   :  { %1355 = vadd.xlane.f32.xlu1 %v1354_v29 }
 0xd95   :  { %v1356_v36 = vpop.xlane.xlu1 %1355 }
 0xd96   :  { %v1357_v37 = vadd.f32 %v1356_v36, %v1349_v35 }
 0xd98   :  { %v1362_v38 = vadd.f32 %v1361_v34, %v1357_v37 }
 0xd9a   :  { %v1396_v40 = vmul.f32 -1.442695, %v1362_v38 }
 0xd9c   :  { %1630 = vpow2.f32 %v1396_v40 }
 0xda9   :  { %v1631_v42 = vpop.eup %1630 }
 0xdaa   :  { %v1366_v5 = vadd.f32 1.0, %v1631_v42 }
 0xdac   :  { %1632 = vrcp.f32 %v1366_v5 }
 0xdb9   :  { %v1633_v44 = vpop.eup %1632 }
 0xdba   :  { %1371 = vperm.xlu0 %1617, %v1633_v44  }
 0xdca   :  { %v1336_v46 = vpop.f32.mrf.mxu1 }
 0xdcb   :  { %v1340_v48 = vadd.f32 %v1336_v46, %v1111_v41 }
 0xdcc   :  { %v1604_v7 = vpop.f32.mrf.mxu1 }
 0xdcd   :  { %v1341_v9 = vadd.f32 %v1340_v48, %v2116_v31 }
 0xdcf   :  { %v1342_v59 = vmax.f32 %v1341_v9, 0.0 }
 0xe35   :  { %v1372_v27 = vpop.permute.xlu0 %1371 }
 0xe36   :  { %v1374_v11 = vmul.f32 %v1372_v27, %v1342_v59 }
 0xe38   :  { %1375 = vst [vmem:[#allocation8] sm:$0xff] %v1374_v11 }
 0xe39   :  { %1705 = shalt.err (!%p1702_p5)
}
 0xe3a   :  { %1385 = dma.vmem_to_hbm [thread:$0]  %s1383_s2, 128, %s2286_s3, [#allocation4]  }
 0xe3b   :  { %1718 = dma.done.wait [#allocation4], 128  }
 0xe3c   :  { %1719 = vsyncadd [#allocation4], 4294967168 }
 0xe3d   :  { %1389 = vsyncpa [#allocation3], 1 }
 0xe3e   :  { %1390 = vsyncpa [#allocation6], 1 }
 0xe3f   :  { %1391 = vsyncpa [#allocation4], 1 }

</bundles_post_ra>
